<compile_context>
chip_gen: v7x
topology: tpu7x:2x2x1
jax: 0.10.0
libtpu: 0.0.40
codegen_flags: <defaults>
</compile_context>

<pallas_src>
import functools
import math

import jax
import jax.numpy as jnp
from jax import lax
from jax.experimental import pallas as pl
from jax.experimental.pallas import tpu as pltpu


def _fc_kernel(x_ref, w_ref, b_ref, o_ref, *scratch, weight_gain, activation):
    # x_ref:  (tm, tk)   input tile
    # w_ref:  (tn, tk)   raw (unscaled, untransposed) weight tile
    # b_ref:  (1,  tn)   pre-scaled bias row (f32)
    # o_ref:  (tm, tn)   output tile
    # scratch: () if o_ref is the f32 accumulator, else (acc_ref,) f32 scratch
    acc_ref = scratch[0] if scratch else o_ref
    k = pl.program_id(2)

    @pl.when(k == 0)
    def _init():
        acc_ref[...] = jnp.zeros_like(acc_ref)

    x = x_ref[...]
    w = w_ref[...]
    if w.dtype != x.dtype:
        w = w.astype(x.dtype)  # in-VMEM cast; MXU wants matching operand dtypes
    # Contract K (last dim of both operands) -> (tm, tn); no transpose needed.
    acc_ref[...] += lax.dot_general(
        x, w,
        dimension_numbers=(((1,), (1,)), ((), ())),
        preferred_element_type=jnp.float32,
    )

    @pl.when(k == pl.num_programs(2) - 1)
    def _finalize():
        # weight_gain folded here (f32, on the accumulator) instead of a full
        # HBM pass over the weight in the wrapper.
        y = acc_ref[...] * weight_gain + b_ref[...]
        if activation == "relu":
            y = jnp.maximum(y, 0.0) * math.sqrt(2.0)
        elif activation == "lrelu":
            y = jnp.where(y >= 0.0, y, 0.2 * y) * math.sqrt(2.0)
        # "linear": nothing to do (torch.addmm path).
        o_ref[...] = y.astype(o_ref.dtype)


def _ceil_to(x, m):
    return ((x + m - 1) // m) * m


def _pick_tiles():
    """Generation-aware default tiles (tm, tn, tk)."""
    kind = ""
    try:
        kind = jax.devices()[0].device_kind.lower()
    except Exception:
        pass
    if "v5 lite" in kind or "v5e" in kind or "v5lite" in kind:
        # v5e: 4x128x128 MXU, 16 MiB scoped VMEM default -> ~5 MiB footprint.
        return 256, 256, 1024
    # v6e / v7x: 2x256x256 MXU -> 256+-wide N fills the array; ~7.5 MiB
    # double-buffered f32 footprint fits every generation's VMEM budget.
    return 256, 512, 1024


def _pad2(a, pad0, pad1):
    if pad0 == 0 and pad1 == 0:
        return a
    return jnp.pad(a, ((0, pad0), (0, pad1)))


def fully_connected_layer(
    x,
    weight,
    bias=None,
    *,
    activation="linear",
    lr_multiplier=1.0,
    tm=None,
    tn=None,
    tk=None,
):
    """x: (M, in_features), weight: (out_features, in_features), bias: (out_features,).

    Returns (M, out_features) in x.dtype, matching FullyConnectedLayer.forward.
    """
    if activation not in ("linear", "relu", "lrelu"):
        # TODO(synk): remaining bias_act activations (tanh/sigmoid/swish/elu/selu/softplus) + clamp.
        raise NotImplementedError(f"activation {activation!r} not implemented")

    M, K = x.shape
    N, K2 = weight.shape
    assert K == K2, "weight must be (out_features, in_features)"
    out_dtype = x.dtype

    weight_gain = float(lr_multiplier) / math.sqrt(K)
    bias_gain = float(lr_multiplier)

    dtm, dtn, dtk = _pick_tiles()
    tm = dtm if tm is None else tm
    tn = dtn if tn is None else tn
    tk = dtk if tk is None else tk

    # Bias is tiny: scale it in f32 in the wrapper (free).
    if bias is not None:
        b = bias.astype(jnp.float32) * jnp.float32(bias_gain)
    else:
        b = jnp.zeros((N,), jnp.float32)
    b = b.reshape(1, N)

    # Pad to sublane/lane-aligned tile multiples (8 on second-to-last, 128 on last).
    # Zero-padding K is benign for the contraction; M/N padding is sliced off.
    m_pad = _ceil_to(M, 8)
    k_pad = _ceil_to(K, 128)
    n_pad = _ceil_to(N, 128)
    tm_ = min(tm, m_pad)
    tk_ = min(tk, k_pad)
    tn_ = min(tn, n_pad)
    m_pad = _ceil_to(m_pad, tm_)
    k_pad = _ceil_to(k_pad, tk_)
    n_pad = _ceil_to(n_pad, tn_)

    xp = _pad2(x, m_pad - M, k_pad - K)
    wp = _pad2(weight, n_pad - N, k_pad - K)   # weight stays (N, K): no scale/transpose pass
    bp = _pad2(b, 0, n_pad - N)

    m_blocks = m_pad // tm_
    n_blocks = n_pad // tn_
    k_blocks = k_pad // tk_

    # N-first grid: on v7x the two TensorCores split the leading parallel axis,
    # so each core streams a disjoint slab of the weight. K stays innermost.
    grid = (n_blocks, m_blocks, k_blocks)

    # f32 outputs accumulate directly into the (resident) output block; only
    # low-precision outputs need a separate f32 scratch accumulator.
    use_scratch = out_dtype != jnp.float32
    scratch_shapes = [pltpu.VMEM((tm_, tn_), jnp.float32)] if use_scratch else []

    x_bytes = jnp.dtype(x.dtype).itemsize
    w_bytes = jnp.dtype(weight.dtype).itemsize
    o_bytes = jnp.dtype(out_dtype).itemsize
    cost = pl.CostEstimate(
        flops=2 * m_pad * n_pad * k_pad,
        transcendentals=0,
        bytes_accessed=(
            m_pad * k_pad * x_bytes * n_blocks      # x re-streamed per N block
            + n_pad * k_pad * w_bytes * m_blocks    # w re-streamed per M block
            + m_pad * n_pad * o_bytes
            + n_pad * 4
        ),
    )

    out = pl.pallas_call(
        functools.partial(
            _fc_kernel, weight_gain=weight_gain, activation=activation
        ),
        out_shape=jax.ShapeDtypeStruct((m_pad, n_pad), out_dtype),
        grid_spec=pltpu.PrefetchScalarGridSpec(
            num_scalar_prefetch=0,
            grid=grid,
            in_specs=[
                pl.BlockSpec((tm_, tk_), lambda j, i, k: (i, k)),   # x
                pl.BlockSpec((tn_, tk_), lambda j, i, k: (j, k)),   # weight (N, K)
                pl.BlockSpec((1, tn_), lambda j, i, k: (0, j)),     # bias row
            ],
            out_specs=pl.BlockSpec((tm_, tn_), lambda j, i, k: (i, j)),
            scratch_shapes=scratch_shapes,
        ),
        compiler_params=pltpu.CompilerParams(
            dimension_semantics=("parallel", "parallel", "arbitrary"),
        ),
        cost_estimate=cost,
    )(xp, wp, bp)

    return out[:M, :N]


if __name__ == "__main__":
    # Small shapes consistent with the module: batch=16, in_features=32, out_features=64.
    M, K, N = 16, 32, 64
    lr_multiplier = 1.0
    bias_init = 0.5

    key = jax.random.PRNGKey(0)
    kx, kw = jax.random.split(key)

    x = jax.random.normal(kx, (M, K), dtype=jnp.float32)
    # Module init: weight = randn([out, in]) / lr_multiplier, bias = full([out], bias_init)
    weight = jax.random.normal(kw, (N, K), dtype=jnp.float32) / lr_multiplier
    bias = jnp.full((N,), bias_init, dtype=jnp.float32)

    # Run the kernel ('linear' default path == torch.addmm branch).
    out = fully_connected_layer(
        x, weight, bias, activation="linear", lr_multiplier=lr_multiplier
    )
    out = jax.block_until_ready(out)

    # Pure-JAX reference, same semantics as the PyTorch forward.
    w_scaled = weight * (lr_multiplier / math.sqrt(K))
    pre = x @ w_scaled.T + bias * lr_multiplier
    assert out.shape == (M, N)
    assert jnp.allclose(out, pre, atol=1e-5, rtol=1e-5)

    # Fused-activation branch (bias_act 'lrelu': alpha=0.2, gain=sqrt(2)).
    out_lrelu = fully_connected_layer(
        x, weight, bias, activation="lrelu", lr_multiplier=lr_multiplier
    )
    out_lrelu = jax.block_until_ready(out_lrelu)
    ref_lrelu = jnp.where(pre >= 0.0, pre, 0.2 * pre) * math.sqrt(2.0)
    assert jnp.allclose(out_lrelu, ref_lrelu, atol=1e-5, rtol=1e-5)

    # No-bias path (bias_act with b=None).
    out_nb = fully_connected_layer(
        x, weight, None, activation="relu", lr_multiplier=lr_multiplier
    )
    out_nb = jax.block_until_ready(out_nb)
    ref_nb = jnp.maximum(x @ w_scaled.T, 0.0) * math.sqrt(2.0)
    assert jnp.allclose(out_nb, ref_nb, atol=1e-5, rtol=1e-5)

    print("KERNEL_OK")
</pallas_src>

<mosaic_0001>
module attributes {stable_mosaic.version = 11 : i64} {
  func.func @_fc_kernel(%arg0: i32, %arg1: i32, %arg2: i32, %arg3: memref<16x128xf32, #tpu.memory_space<vmem>>, %arg4: memref<128x128xf32, #tpu.memory_space<vmem>>, %arg5: memref<1x128xf32, #tpu.memory_space<vmem>>, %arg6: memref<16x128xf32, #tpu.memory_space<vmem>>) attributes {dimension_semantics = [#tpu.dimension_semantics<parallel>, #tpu.dimension_semantics<parallel>, #tpu.dimension_semantics<arbitrary>], iteration_bounds = array<i64: 1, 1, 1>, scalar_prefetch = 0 : i64, scratch_operands = 0 : i64, tpu.core_type = #tpu.core_type<tc>, window_params = [{transform_indices = @transform_0, window_bounds = array<i64: 16, 128>}, {transform_indices = @transform_1, window_bounds = array<i64: 128, 128>}, {transform_indices = @transform_2, window_bounds = array<i64: 1, 128>}, {transform_indices = @transform_3, window_bounds = array<i64: 16, 128>}]} {
    %c0_i32 = arith.constant 0 : i32
    %0 = arith.cmpi eq, %arg2, %c0_i32 : i32
    %1 = arith.extui %0 : i1 to i32
    %c0_i32_0 = arith.constant 0 : i32
    %2 = arith.cmpi ne, %1, %c0_i32_0 : i32
    scf.if %2 {
      %cst_10 = arith.constant 0.000000e+00 : f32
      %12 = vector.broadcast %cst_10 : f32 to vector<16x128xf32>
      %c0_11 = arith.constant 0 : index
      %c0_12 = arith.constant 0 : index
      %13 = vector.load %arg6[%c0_11, %c0_12] : memref<16x128xf32, #tpu.memory_space<vmem>>, vector<16x128xf32>
      tpu.vector_store %arg6[%c0_11, %c0_12], %12 {strides = array<i32>} : memref<16x128xf32, #tpu.memory_space<vmem>>, vector<16x128xf32>,
    } else {
    }
    %c0 = arith.constant 0 : index
    %c0_1 = arith.constant 0 : index
    %3 = vector.load %arg3[%c0, %c0_1] : memref<16x128xf32, #tpu.memory_space<vmem>>, vector<16x128xf32>
    %c0_2 = arith.constant 0 : index
    %c0_3 = arith.constant 0 : index
    %4 = vector.load %arg4[%c0_2, %c0_3] : memref<128x128xf32, #tpu.memory_space<vmem>>, vector<128x128xf32>
    %c0_4 = arith.constant 0 : index
    %c0_5 = arith.constant 0 : index
    %5 = vector.load %arg6[%c0_4, %c0_5] : memref<16x128xf32, #tpu.memory_space<vmem>>, vector<16x128xf32>
    %cst = arith.constant dense<0.000000e+00> : vector<16x128xf32>
    %6 = tpu.matmul %3, %4, %cst {dimension_numbers = #tpu.dot_dimension_numbers<[1], [1], [0], [0], [0, 0, 1, 0], [], []>} : vector<16x128xf32>, vector<128x128xf32>, vector<16x128xf32> -> vector<16x128xf32>
    %7 = arith.addf %5, %6 : vector<16x128xf32>
    %c0_6 = arith.constant 0 : index
    %c0_7 = arith.constant 0 : index
    %8 = vector.load %arg6[%c0_6, %c0_7] : memref<16x128xf32, #tpu.memory_space<vmem>>, vector<16x128xf32>
    tpu.vector_store %arg6[%c0_6, %c0_7], %7 {strides = array<i32>} : memref<16x128xf32, #tpu.memory_space<vmem>>, vector<16x128xf32>,
    %c0_i32_8 = arith.constant 0 : i32
    %9 = arith.cmpi eq, %arg2, %c0_i32_8 : i32
    %10 = arith.extui %9 : i1 to i32
    %c0_i32_9 = arith.constant 0 : i32
    %11 = arith.cmpi ne, %10, %c0_i32_9 : i32
    scf.if %11 {
      %c0_10 = arith.constant 0 : index
      %c0_11 = arith.constant 0 : index
      %12 = vector.load %arg6[%c0_10, %c0_11] : memref<16x128xf32, #tpu.memory_space<vmem>>, vector<16x128xf32>
      %cst_12 = arith.constant 0.176776692 : f32
      %13 = vector.broadcast %cst_12 : f32 to vector<16x128xf32>
      %14 = arith.mulf %12, %13 : vector<16x128xf32>
      %c0_13 = arith.constant 0 : index
      %c0_14 = arith.constant 0 : index
      %15 = vector.load %arg5[%c0_13, %c0_14] : memref<1x128xf32, #tpu.memory_space<vmem>>, vector<1x128xf32>
      %16 = vector.broadcast %15 : vector<1x128xf32> to vector<16x128xf32>
      %17 = arith.addf %14, %16 : vector<16x128xf32>
      %c0_15 = arith.constant 0 : index
      %c0_16 = arith.constant 0 : index
      %18 = vector.load %arg6[%c0_15, %c0_16] : memref<16x128xf32, #tpu.memory_space<vmem>>, vector<16x128xf32>
      tpu.vector_store %arg6[%c0_15, %c0_16], %17 {strides = array<i32>} : memref<16x128xf32, #tpu.memory_space<vmem>>, vector<16x128xf32>,
    } else {
    }
    return
  }
  func.func @transform_0(%arg0: i32, %arg1: i32, %arg2: i32) -> (i32, i32) {
    %c0_i32 = arith.constant 0 : i32
    return %arg1, %arg2 : i32, i32
  }
  func.func @transform_1(%arg0: i32, %arg1: i32, %arg2: i32) -> (i32, i32) {
    %c0_i32 = arith.constant 0 : i32
    return %arg0, %arg2 : i32, i32
  }
  func.func @transform_2(%arg0: i32, %arg1: i32, %arg2: i32) -> (i32, i32) {
    %c0_i32 = arith.constant 0 : i32
    %c0_i32_0 = arith.constant 0 : i32
    return %c0_i32, %arg0 : i32, i32
  }
  func.func @transform_3(%arg0: i32, %arg1: i32, %arg2: i32) -> (i32, i32) {
    %c0_i32 = arith.constant 0 : i32
    return %arg1, %arg0 : i32, i32
  }
}

</mosaic_0001>

<bundles_post_ra>
// kernel: tpu_custom_call.1
= control target key start
LH: loop header
LB: loop body
LE: loop exit
PB: predicated region body
PF: predicated region fallthrough
CT: control target
= control target key end

     0   :  { %8 = vsyncpa [#allocation3], 0  ;;  %s421_s0 = inlined_call_operand.hbm [shape: f32[16,128], index: 0, kind: input, shape index: {}]   ;;  %s422_s1 = inlined_call_operand.hbm [shape: f32[128,128], index: 1, kind: input, shape index: {}]   ;;  %s423_s2 = inlined_call_operand.vmem [shape: f32[1,128], index: 2, kind: input, shape index: {}]   ;;  %s424_s3 = inlined_call_operand.hbm [shape: f32[16,128], index: 3, kind: output, shape index: {}]  }
   0x1   :  { %9 = vsyncpa [#allocation6], 0 }
   0x2   :  { %10 = vsyncpa [#allocation4], 0  ;;  %s348_s12 = smov [#allocation2]   ;;  %s276_s16 = scalar_lea.hbm %s421_s0, 256 }
   0x3   :  { %s16_s13 = sshll.u32 %s348_s12, 4  ;;  %p277_p0 = scmp.ne.s32.totalorder %s421_s0, %s276_s16  ;;  %s17_s13 = int_to_ptr.vmem [resolvable:$true] %s16_s13 }
   0x4   :  { %p280_p1 = scmp.lt.u32.totalorder %s276_s16, %s421_s0 }
   0x6   :  { %p282_p2 = pnand %p280_p1, %p277_p0 }
   0x8   :  { %285 = shalt.err (!%p282_p2)
}
   0x9   :  { %s286_s21 = scalar_lea.vmem %s17_s13, 256  ;;  %p291_p4 = scmp.lt.s32.totalorder %s17_s13, %s17_s13 }
   0xa   :  { %p287_p3 = scmp.ne.s32.totalorder %s17_s13, %s286_s21  ;;  %p292_p5 = scmp.lt.s32.totalorder %s286_s21, %s286_s21 }
   0xc   :  { %p293_p6 = por %p292_p5, %p291_p4 }
   0xe   :  { %p294_p7 = pnand %p293_p6, %p287_p3 }
  0x10   :  { %297 = shalt.err (!%p294_p7)
}
  0x11   :  { %s349_s22 = smov 128   ;;  %s350_s23 = smov 8  }
  0x12   :  { %22 = dma.hbm_to_vmem [thread:$0]  %s421_s0, 256, %s17_s13, [#allocation3], %s349_s22, %s349_s22, %s350_s23  }
  0x13   :  { %s351_s26 = smov [#allocation5]   ;;  %s298_s30 = scalar_lea.hbm %s422_s1, 2048 }
  0x14   :  { %s28_s27 = sshll.u32 %s351_s26, 4  ;;  %p299_p8 = scmp.ne.s32.totalorder %s422_s1, %s298_s30  ;;  %s29_s27 = int_to_ptr.vmem [resolvable:$true] %s28_s27 }
  0x15   :  { %p302_p9 = scmp.lt.u32.totalorder %s298_s30, %s422_s1 }
  0x17   :  { %p304_p10 = pnand %p302_p9, %p299_p8 }
  0x19   :  { %307 = shalt.err (!%p304_p10)
}
  0x1a   :  { %s308_s8 = scalar_lea.vmem %s29_s27, 2048  ;;  %p313_p12 = scmp.lt.s32.totalorder %s29_s27, %s29_s27 }
  0x1b   :  { %p309_p11 = scmp.ne.s32.totalorder %s29_s27, %s308_s8  ;;  %p314_p13 = scmp.lt.s32.totalorder %s308_s8, %s308_s8 }
  0x1d   :  { %p315_p0 = por %p314_p13, %p313_p12 }
  0x1f   :  { %p316_p1 = pnand %p315_p0, %p309_p11 }
  0x21   :  { %319 = shalt.err (!%p316_p1)
}
  0x22   :  { %34 = dma.hbm_to_vmem [thread:$0]  %s422_s1, 2048, %s29_s27, [#allocation6], %s349_s22, %s349_s22, %s350_s23  }
  0x23   :  { %342 = dma.done.wait [#allocation3], 256  }
  0x24   :  { %343 = vsyncadd [#allocation3], 4294967040 }
  0x25   :  { %344 = dma.done.wait [#allocation6], 2048  }
  0x26   :  { %345 = vsyncadd [#allocation6], 4294965248  ;;  %v51_v0 = vld [vmem:[#allocation5] sm:$0xff]  ;;  %v52_v1 = vld [vmem:[#allocation5 + $0x8] sm:$0xff]  ;;  %s352_s11 = smov [#allocation7]  }
  0x27   :  { %v53_v2 = vld [vmem:[#allocation5 + $0x10] sm:$0xff]  ;;  %v238_v3 = vpack.c.bf16 %v52_v1, %v51_v0  ;;  %v54_v4 = vld [vmem:[#allocation5 + $0x18] sm:$0xff]  ;;  %v55_v7 = vld [vmem:[#allocation5 + $0x20] sm:$0xff]  ;;  %s171_s12 = sshll.u32 %s352_s11, 4  ;;  %s172_s12 = int_to_ptr.vmem [resolvable:$true] %s171_s12 }
  0x28   :  { %v242_v5 = vpack.c.bf16 %v54_v4, %v53_v2  ;;  %v49_v6 = vld [vmem:[#allocation2] sm:$0xff]  ;;  %v56_v8 = vld [vmem:[#allocation5 + $0x28] sm:$0xff]  ;;  %v58_v11 = vld [vmem:[#allocation5 + $0x38] sm:$0xff]  ;;  %s320_s13 = scalar_lea.vmem %s172_s12, 256  ;;  %p325_p3 = scmp.lt.s32.totalorder %s172_s12, %s172_s12 }
  0x29   :  { %239 = vmatprep.subr.bf16.mxu0 %v238_v3  ;;  %235 = vmatprep.mubr.f32.mxu0 %v49_v6  ;;  %v246_v9 = vpack.c.bf16 %v56_v8, %v55_v7  ;;  %v57_v10 = vld [vmem:[#allocation5 + $0x30] sm:$0xff]  ;;  %v59_v13 = vld [vmem:[#allocation5 + $0x40] sm:$0xff]  ;;  %v60_v14 = vld [vmem:[#allocation5 + $0x48] sm:$0xff]  ;;  %p321_p2 = scmp.ne.s32.totalorder %s172_s12, %s320_s13  ;;  %p326_p4 = scmp.lt.s32.totalorder %s320_s13, %s320_s13 }
  0x2a   :  { %241 = vmatpush3.bf16.xpose.msra.mxu0 %v238_v3  ;;  %v250_v12 = vpack.c.bf16 %v58_v11, %v57_v10  ;;  %v254_v15 = vpack.c.bf16 %v60_v14, %v59_v13  ;;  %v61_v16 = vld [vmem:[#allocation5 + $0x50] sm:$0xff]  ;;  %v62_v17 = vld [vmem:[#allocation5 + $0x58] sm:$0xff]  ;;  %v63_v19 = vld [vmem:[#allocation5 + $0x60] sm:$0xff] }
  0x2b   :  { %243 = vmatprep.subr.bf16.mxu0 %v242_v5  ;;  %v258_v18 = vpack.c.bf16 %v62_v17, %v61_v16  ;;  %v64_v20 = vld [vmem:[#allocation5 + $0x68] sm:$0xff]  ;;  %v65_v22 = vld [vmem:[#allocation5 + $0x70] sm:$0xff]  ;;  %v66_v23 = vld [vmem:[#allocation5 + $0x78] sm:$0xff]  ;;  %p327_p5 = por %p326_p4, %p325_p3 }
  0x2c   :  { %v262_v21 = vpack.c.bf16 %v64_v20, %v63_v19  ;;  %v266_v24 = vpack.c.bf16 %v66_v23, %v65_v22  ;;  %v50_v25 = vld [vmem:[#allocation2 + $0x8] sm:$0xff]  ;;  %v184_v28 = vld [vmem:[%s423_s2] ss:$0 sm:$0xff] }
  0x2d   :  { %p328_p6 = pnand %p327_p5, %p321_p2 }
  0x32   :  { %245 = vmatpush3.bf16.xpose.msra.mxu0 %v242_v5 }
  0x33   :  { %247 = vmatprep.subr.bf16.mxu0 %v246_v9 }
  0x3a   :  { %249 = vmatpush3.bf16.xpose.msra.mxu0 %v246_v9 }
  0x3b   :  { %251 = vmatprep.subr.bf16.mxu0 %v250_v12 }
  0x42   :  { %253 = vmatpush3.bf16.xpose.msra.mxu0 %v250_v12 }
  0x43   :  { %255 = vmatprep.subr.bf16.mxu0 %v254_v15 }
  0x4a   :  { %257 = vmatpush3.bf16.xpose.msra.mxu0 %v254_v15 }
  0x4b   :  { %259 = vmatprep.subr.bf16.mxu0 %v258_v18 }
  0x52   :  { %261 = vmatpush3.bf16.xpose.msra.mxu0 %v258_v18 }
  0x53   :  { %263 = vmatprep.subr.bf16.mxu0 %v262_v21 }
  0x5a   :  { %265 = vmatpush3.bf16.xpose.msra.mxu0 %v262_v21 }
  0x5b   :  { %267 = vmatprep.subr.bf16.mxu0 %v266_v24 }
  0x62   :  { %269 = vmatpush3.bf16.xpose.msra.mxu0 %v266_v24 }
  0x69   :  { %236 = vmatmul.mubr.f32.vlgmr.msra.gmra.mrb[0].mxu0 %v50_v25 }
 0x13c   :  { %v237_v26 = vpop.f32.mrb[0].mxu0 }
 0x13d   :  { %v135_v27 = vpop.f32.mrb[1].mxu0  ;;  %v154_v29 = vmul.f32 0.17677669, %v237_v26 }
 0x13e   :  { %v153_v30 = vmul.f32 0.17677669, %v135_v27 }
 0x13f   :  { %v163_v31 = vadd.f32 %v184_v28, %v154_v29 }
 0x140   :  { %v162_v32 = vadd.f32 %v184_v28, %v153_v30 }
 0x141   :  { %165 = vst [vmem:[#allocation7 + $0x8] sm:$0xff] %v163_v31 }
 0x142   :  { %164 = vst [vmem:[#allocation7] sm:$0xff] %v162_v32 }
 0x143   :  { %331 = shalt.err (!%p328_p6)
}
 0x144   :  { %s332_s2 = scalar_lea.hbm %s424_s3, 256 }
 0x145   :  { %p333_p7 = scmp.ne.s32.totalorder %s424_s3, %s332_s2  ;;  %p336_p8 = scmp.lt.u32.totalorder %s332_s2, %s424_s3 }
 0x147   :  { %p338_p9 = pnand %p336_p8, %p333_p7 }
 0x149   :  { %341 = shalt.err (!%p338_p9)
}
 0x14a   :  { %177 = dma.vmem_to_hbm [thread:$0]  %s172_s12, 256, %s424_s3, [#allocation4], %s349_s22, %s349_s22, %s350_s23  }
 0x14b   :  { %346 = dma.done.wait [#allocation4], 256  }
 0x14c   :  { %347 = vsyncadd [#allocation4], 4294967040 }
 0x14d   :  { %181 = vsyncpa [#allocation3], 1 }
 0x14e   :  { %182 = vsyncpa [#allocation6], 1 }
 0x14f   :  { %183 = vsyncpa [#allocation4], 1 }

</bundles_post_ra>
